<compile_context>
chip_gen: v7x
topology: tpu7x:2x2x1
jax: 0.10.0
libtpu: 0.0.40
codegen_flags: <defaults>
</compile_context>

<pallas_src>
import functools

import jax
import jax.numpy as jnp
from jax import lax
from jax.experimental import pallas as pl
from jax.experimental.pallas import tpu as pltpu


def _full_additive_kernel(w12_ref, mat_ref, out_ref, *, normalize):
    # One MXU matmul: [tile_b, 2D] x [2D, D] -> [tile_b, D] (f32 accumulation).
    composed = jnp.dot(
        w12_ref[...], mat_ref[...], preferred_element_type=jnp.float32
    )

    if normalize:
        # torch.nn.functional.normalize(p=2, dim=1, eps=1e-12):
        #   x / max(||x||, eps)  ==  x * rsqrt(max(sum(x^2), eps^2))
        sumsq = jnp.sum(composed * composed, axis=-1, keepdims=True)
        inv = lax.rsqrt(jnp.maximum(sumsq, 1e-24))
        composed = composed * inv

    out_ref[...] = composed.astype(out_ref.dtype)


def _pick_tile_b(B):
    # Whole batch in one step when small; otherwise the largest MXU-friendly
    # tile that divides B (>= 2 steps naturally arise for big B, which lets the
    # 'parallel' grid axis shard across the two v7x TensorCores).
    if B <= 256:
        return B
    for t in (256, 128, 64, 32, 16, 8):
        if B % t == 0:
            return t
    return B  # fallback: single step


def full_additive(w1, w2, adj_matrix, noun_matrix, *, normalize_embeddings, tile_b=None):
    B, D = w1.shape
    assert w2.shape == (B, D)
    assert adj_matrix.shape == (D, D) and noun_matrix.shape == (D, D)

    if tile_b is None:
        tile_b = _pick_tile_b(B)
    assert B % tile_b == 0

    # Hoisted, one-time argument prep (parameters are grid-invariant):
    #   w12 = [w1 | w2]           : [B, 2D]
    #   mat = [adj.T ; noun.T]    : [2D, D]
    # so  w12 @ mat == w1 @ adj.T + w2 @ noun.T  (no in-kernel transpose, fused K=2D).
    w12 = jnp.concatenate([w1, w2], axis=1)
    mat = jnp.concatenate([adj_matrix.T, noun_matrix.T], axis=0)

    kernel = functools.partial(_full_additive_kernel, normalize=normalize_embeddings)

    # Rough double-buffered f32 VMEM working set; only raise the scoped limit
    # when the defaults (16 MiB v5e / 32 MiB v6e-v7x) would be too tight.
    est_bytes = 4 * (2 * tile_b * 2 * D + 2 * (2 * D) * D + 2 * tile_b * D)
    vmem_limit = None
    if est_bytes > (12 << 20):
        vmem_limit = min(int(est_bytes * 1.5), 60 << 20)  # headroom under v7x 64 MiB
    # TODO(synk): for very large D (> ~1400 on v7x) tile the contraction/output dims
    # and/or use pipeline_mode=pl.Buffered(1) on the constant matrix instead of
    # keeping the full [2D, D] slab resident.

    compiler_params = pltpu.CompilerParams(
        dimension_semantics=("parallel",),
        vmem_limit_bytes=vmem_limit,
    )

    grid = (B // tile_b,)
    return pl.pallas_call(
        kernel,
        out_shape=jax.ShapeDtypeStruct((B, D), jnp.float32),
        grid_spec=pltpu.PrefetchScalarGridSpec(
            num_scalar_prefetch=0,
            grid=grid,
            in_specs=[
                pl.BlockSpec((tile_b, 2 * D), lambda i: (i, 0)),  # [w1|w2] tile
                pl.BlockSpec((2 * D, D), lambda i: (0, 0)),       # stacked [adj.T; noun.T] (resident)
            ],
            out_specs=pl.BlockSpec((tile_b, D), lambda i: (i, 0)),
        ),
        compiler_params=compiler_params,
    )(w12, mat)


def full_additive_ref(w1, w2, adj_matrix, noun_matrix, *, normalize_embeddings):
    composed = w1 @ adj_matrix.T + w2 @ noun_matrix.T
    if normalize_embeddings:
        norm = jnp.linalg.norm(composed, axis=1, keepdims=True)
        composed = composed / jnp.maximum(norm, 1e-12)
    return composed


if __name__ == "__main__":
    key = jax.random.PRNGKey(0)
    k1, k2, k3, k4 = jax.random.split(key, 4)

    B, D = 16, 128  # batch_size x embedding_size
    normalize_embeddings = True

    # Inputs (two word embeddings per example).
    w1 = jax.random.normal(k1, (B, D), dtype=jnp.float32)
    w2 = jax.random.normal(k2, (B, D), dtype=jnp.float32)

    # Parameters: torch.eye(input_dim) init, perturbed deterministically so the
    # matmuls are non-trivial (synthetic init, not a checkpoint load).
    adj_matrix = jnp.eye(D, dtype=jnp.float32) + 0.01 * jax.random.normal(k3, (D, D), jnp.float32)
    noun_matrix = jnp.eye(D, dtype=jnp.float32) + 0.01 * jax.random.normal(k4, (D, D), jnp.float32)

    out = full_additive(
        w1, w2, adj_matrix, noun_matrix, normalize_embeddings=normalize_embeddings
    )
    out = jax.block_until_ready(out)

    ref = full_additive_ref(
        w1, w2, adj_matrix, noun_matrix, normalize_embeddings=normalize_embeddings
    )
    assert out.shape == (B, D)
    assert jnp.allclose(out, ref, atol=1e-5, rtol=1e-5), "mismatch vs reference"

    print("KERNEL_OK")
</pallas_src>

<mosaic_0001>
module attributes {stable_mosaic.version = 11 : i64} {
  func.func @_full_additive_kernel(%arg0: i32, %arg1: memref<16x256xf32, #tpu.memory_space<vmem>>, %arg2: memref<256x128xf32, #tpu.memory_space<vmem>>, %arg3: memref<16x128xf32, #tpu.memory_space<vmem>>) attributes {dimension_semantics = [#tpu.dimension_semantics<parallel>], iteration_bounds = array<i64: 1>, scalar_prefetch = 0 : i64, scratch_operands = 0 : i64, tpu.core_type = #tpu.core_type<tc>, window_params = [{transform_indices = @transform_0, window_bounds = array<i64: 16, 256>}, {pipeline_mode = #tpu.pipeline_mode<synchronous>, transform_indices = @transform_1, window_bounds = array<i64: 256, 128>}, {transform_indices = @transform_2, window_bounds = array<i64: 16, 128>}]} {
    %c0 = arith.constant 0 : index
    %c0_0 = arith.constant 0 : index
    %0 = vector.load %arg1[%c0, %c0_0] : memref<16x256xf32, #tpu.memory_space<vmem>>, vector<16x256xf32>
    %c0_1 = arith.constant 0 : index
    %c0_2 = arith.constant 0 : index
    %1 = vector.load %arg2[%c0_1, %c0_2] : memref<256x128xf32, #tpu.memory_space<vmem>>, vector<256x128xf32>
    %cst = arith.constant dense<0.000000e+00> : vector<16x128xf32>
    %2 = tpu.matmul %0, %1, %cst {dimension_numbers = #tpu.dot_dimension_numbers<[1], [0], [0], [1], [0, 0, 1, 1], [], []>} : vector<16x256xf32>, vector<256x128xf32>, vector<16x128xf32> -> vector<16x128xf32>
    %3 = arith.mulf %2, %2 : vector<16x128xf32>
    %cst_3 = arith.constant dense<0.000000e+00> : vector<16xf32>
    %4 = vector.multi_reduction <add>, %3, %cst_3 [1] : vector<16x128xf32> to vector<16xf32>
    %5 = vector.shape_cast %4 : vector<16xf32> to vector<16x1xf32>
    %cst_4 = arith.constant 1.000000e-24 : f32
    %6 = vector.broadcast %cst_4 : f32 to vector<16x1xf32>
    %7 = arith.maximumf %5, %6 : vector<16x1xf32>
    %8 = math.rsqrt %7 : vector<16x1xf32>
    %9 = vector.broadcast %8 : vector<16x1xf32> to vector<16x128xf32>
    %10 = arith.mulf %2, %9 : vector<16x128xf32>
    %c0_5 = arith.constant 0 : index
    %c0_6 = arith.constant 0 : index
    %11 = vector.load %arg3[%c0_5, %c0_6] : memref<16x128xf32, #tpu.memory_space<vmem>>, vector<16x128xf32>
    tpu.vector_store %arg3[%c0_5, %c0_6], %10 {strides = array<i32>} : memref<16x128xf32, #tpu.memory_space<vmem>>, vector<16x128xf32>,
    return
  }
  func.func @transform_0(%arg0: i32) -> (i32, i32) {
    %c0_i32 = arith.constant 0 : i32
    %c0_i32_0 = arith.constant 0 : i32
    return %arg0, %c0_i32 : i32, i32
  }
  func.func @transform_1(%arg0: i32) -> (i32, i32) {
    %c0_i32 = arith.constant 0 : i32
    %c0_i32_0 = arith.constant 0 : i32
    %c0_i32_1 = arith.constant 0 : i32
    return %c0_i32, %c0_i32_0 : i32, i32
  }
  func.func @transform_2(%arg0: i32) -> (i32, i32) {
    %c0_i32 = arith.constant 0 : i32
    %c0_i32_0 = arith.constant 0 : i32
    return %arg0, %c0_i32 : i32, i32
  }
}

</mosaic_0001>

<bundles_post_ra>
// kernel: tpu_custom_call.1
= control target key start
LH: loop header
LB: loop body
LE: loop exit
PB: predicated region body
PF: predicated region fallthrough
CT: control target
= control target key end

     0   :  { %7 = vsyncpa [#allocation3], 0  ;;  %s416_s0 = inlined_call_operand.hbm [shape: f32[16,256], index: 0, kind: input, shape index: {}]   ;;  %s417_s1 = inlined_call_operand.hbm [shape: f32[256,128], index: 1, kind: input, shape index: {}]   ;;  %s418_s2 = inlined_call_operand.hbm [shape: f32[16,128], index: 2, kind: output, shape index: {}]  }
   0x1   :  { %8 = vsyncpa [#allocation6], 0 }
   0x2   :  { %9 = vsyncpa [#allocation4], 0  ;;  %s352_s9 = smov [#allocation2]   ;;  %s280_s13 = scalar_lea.hbm %s416_s0, 512 }
   0x3   :  { %s15_s10 = sshll.u32 %s352_s9, 4  ;;  %p281_p0 = scmp.ne.s32.totalorder %s416_s0, %s280_s13  ;;  %s16_s10 = int_to_ptr.vmem [resolvable:$true] %s15_s10 }
   0x4   :  { %p284_p1 = scmp.lt.u32.totalorder %s280_s13, %s416_s0 }
   0x6   :  { %p286_p2 = pnand %p284_p1, %p281_p0 }
   0x8   :  { %289 = shalt.err (!%p286_p2)
}
   0x9   :  { %s290_s18 = scalar_lea.vmem %s16_s10, 512  ;;  %p295_p4 = scmp.lt.s32.totalorder %s16_s10, %s16_s10 }
   0xa   :  { %p291_p3 = scmp.ne.s32.totalorder %s16_s10, %s290_s18  ;;  %p296_p5 = scmp.lt.s32.totalorder %s290_s18, %s290_s18 }
   0xc   :  { %p297_p6 = por %p296_p5, %p295_p4 }
   0xe   :  { %p298_p7 = pnand %p297_p6, %p291_p3 }
  0x10   :  { %301 = shalt.err (!%p298_p7)
}
  0x11   :  { %s353_s19 = smov 256   ;;  %s354_s20 = smov 16  }
  0x12   :  { %21 = dma.hbm_to_vmem [thread:$0]  %s416_s0, 512, %s16_s10, [#allocation3], %s353_s19, %s353_s19, %s354_s20  }
  0x13   :  { %s355_s23 = smov [#allocation5]   ;;  %s302_s27 = scalar_lea.hbm %s417_s1, 4096 }
  0x14   :  { %s27_s24 = sshll.u32 %s355_s23, 4  ;;  %p303_p8 = scmp.ne.s32.totalorder %s417_s1, %s302_s27  ;;  %s28_s24 = int_to_ptr.vmem [resolvable:$true] %s27_s24 }
  0x15   :  { %p306_p9 = scmp.lt.u32.totalorder %s302_s27, %s417_s1 }
  0x17   :  { %p308_p10 = pnand %p306_p9, %p303_p8 }
  0x19   :  { %311 = shalt.err (!%p308_p10)
}
  0x1a   :  { %s312_s4 = scalar_lea.vmem %s28_s24, 4096  ;;  %p317_p12 = scmp.lt.s32.totalorder %s28_s24, %s28_s24 }
  0x1b   :  { %p313_p11 = scmp.ne.s32.totalorder %s28_s24, %s312_s4  ;;  %p318_p13 = scmp.lt.s32.totalorder %s312_s4, %s312_s4 }
  0x1d   :  { %p319_p0 = por %p318_p13, %p317_p12 }
  0x1f   :  { %p320_p1 = pnand %p319_p0, %p313_p11 }
  0x21   :  { %323 = shalt.err (!%p320_p1)
}
  0x22   :  { %s356_s0 = smov 128   ;;  %s357_s5 = smov 8  }
  0x23   :  { %33 = dma.hbm_to_vmem [thread:$0]  %s417_s1, 4096, %s28_s24, [#allocation6], %s356_s0, %s356_s0, %s357_s5  }
  0x24   :  { %346 = dma.done.wait [#allocation3], 512  }
  0x25   :  { %347 = vsyncadd [#allocation3], 4294966784 }
  0x26   :  { %348 = dma.done.wait [#allocation6], 4096  }
  0x27   :  { %349 = vsyncadd [#allocation6], 4294963200  ;;  %v60_v0 = vld [vmem:[#allocation5 + $0x80] sm:$0xff]  ;;  %v61_v1 = vld [vmem:[#allocation5 + $0x88] sm:$0xff]  ;;  %s358_s1 = smov [#allocation7]  }
  0x28   :  { %v44_v2 = vld [vmem:[#allocation5] sm:$0xff]  ;;  %v221_v3 = vpack.c.bf16 %v61_v1, %v60_v0  ;;  %v45_v4 = vld [vmem:[#allocation5 + $0x8] sm:$0xff]  ;;  %v62_v5 = vld [vmem:[#allocation5 + $0x90] sm:$0xff]  ;;  %s170_s8 = sshll.u32 %s358_s1, 4  ;;  %s171_s8 = int_to_ptr.vmem [resolvable:$true] %s170_s8 }
  0x29   :  { %v63_v6 = vld [vmem:[#allocation5 + $0x98] sm:$0xff]  ;;  %v223_v7 = vpack.c.bf16 %v45_v4, %v44_v2  ;;  %v46_v9 = vld [vmem:[#allocation5 + $0x10] sm:$0xff]  ;;  %v64_v11 = vld [vmem:[#allocation5 + $0xa0] sm:$0xff]  ;;  %s324_s9 = scalar_lea.vmem %s171_s8, 256  ;;  %p329_p3 = scmp.lt.s32.totalorder %s171_s8, %s171_s8 }
  0x2a   :  { %v225_v8 = vpack.c.bf16 %v63_v6, %v62_v5  ;;  %v47_v10 = vld [vmem:[#allocation5 + $0x18] sm:$0xff]  ;;  %222 = vmatprep.subr.bf16.mxu0 %v221_v3  ;;  %253 = vmatprep.subr.bf16.mxu1 %v221_v3  ;;  %v65_v12 = vld [vmem:[#allocation5 + $0xa8] sm:$0xff]  ;;  %v48_v15 = vld [vmem:[#allocation5 + $0x20] sm:$0xff]  ;;  %p325_p2 = scmp.ne.s32.totalorder %s171_s8, %s324_s9  ;;  %p330_p4 = scmp.lt.s32.totalorder %s324_s9, %s324_s9 }
  0x2b   :  { %224 = vmatpush3.bf16.msra.mxu0 %v223_v7  ;;  %261 = vmatpush3.bf16.msra.mxu1 %v223_v7  ;;  %v227_v13 = vpack.c.bf16 %v47_v10, %v46_v9  ;;  %v229_v14 = vpack.c.bf16 %v65_v12, %v64_v11  ;;  %v49_v16 = vld [vmem:[#allocation5 + $0x28] sm:$0xff]  ;;  %v66_v17 = vld [vmem:[#allocation5 + $0xb0] sm:$0xff]  ;;  %v67_v18 = vld [vmem:[#allocation5 + $0xb8] sm:$0xff] }
  0x2c   :  { %226 = vmatprep.subr.bf16.mxu0 %v225_v8  ;;  %254 = vmatprep.subr.bf16.mxu1 %v225_v8  ;;  %v231_v19 = vpack.c.bf16 %v49_v16, %v48_v15  ;;  %v233_v20 = vpack.c.bf16 %v67_v18, %v66_v17  ;;  %v50_v21 = vld [vmem:[#allocation5 + $0x30] sm:$0xff]  ;;  %v51_v22 = vld [vmem:[#allocation5 + $0x38] sm:$0xff]  ;;  %v68_v23 = vld [vmem:[#allocation5 + $0xc0] sm:$0xff]  ;;  %p331_p5 = por %p330_p4, %p329_p3 }
  0x2d   :  { %v69_v24 = vld [vmem:[#allocation5 + $0xc8] sm:$0xff]  ;;  %v43_v26 = vld [vmem:[#allocation2 + $0x18] sm:$0xff]  ;;  %v235_v27 = vpack.c.bf16 %v51_v22, %v50_v21  ;;  %v52_v29 = vld [vmem:[#allocation5 + $0x40] sm:$0xff] }
  0x2e   :  { %v41_v25 = vld [vmem:[#allocation2 + $0x8] sm:$0xff]  ;;  %v237_v28 = vpack.c.bf16 %v69_v24, %v68_v23  ;;  %v70_v31 = vld [vmem:[#allocation5 + $0xd0] sm:$0xff]  ;;  %v71_v32 = vld [vmem:[#allocation5 + $0xd8] sm:$0xff]  ;;  %145 = vmatprep.mubr.f32.mxu1 %v43_v26  ;;  %p332_p6 = pnand %p331_p5, %p325_p2 }
  0x2f   :  { %228 = vmatpush3.bf16.msra.mxu0 %v227_v13  ;;  %262 = vmatpush3.bf16.msra.mxu1 %v227_v13  ;;  %v53_v30 = vld [vmem:[#allocation5 + $0x48] sm:$0xff]  ;;  %v241_v34 = vpack.c.bf16 %v71_v32, %v70_v31  ;;  %v54_v35 = vld [vmem:[#allocation5 + $0x50] sm:$0xff]  ;;  %v55_v36 = vld [vmem:[#allocation5 + $0x58] sm:$0xff] }
  0x30   :  { %230 = vmatprep.subr.bf16.mxu0 %v229_v14  ;;  %255 = vmatprep.subr.bf16.mxu1 %v229_v14  ;;  %v239_v33 = vpack.c.bf16 %v53_v30, %v52_v29  ;;  %v72_v37 = vld [vmem:[#allocation5 + $0xe0] sm:$0xff]  ;;  %v73_v38 = vld [vmem:[#allocation5 + $0xe8] sm:$0xff]  ;;  %v243_v39 = vpack.c.bf16 %v55_v36, %v54_v35  ;;  %v74_v43 = vld [vmem:[#allocation5 + $0xf0] sm:$0xff] }
  0x31   :  { %140 = vmatprep.mubr.f32.mxu0 %v41_v25  ;;  %v245_v40 = vpack.c.bf16 %v73_v38, %v72_v37  ;;  %v56_v41 = vld [vmem:[#allocation5 + $0x60] sm:$0xff]  ;;  %v57_v42 = vld [vmem:[#allocation5 + $0x68] sm:$0xff]  ;;  %v75_v44 = vld [vmem:[#allocation5 + $0xf8] sm:$0xff] }
  0x32   :  { %v247_v45 = vpack.c.bf16 %v57_v42, %v56_v41  ;;  %v249_v46 = vpack.c.bf16 %v75_v44, %v74_v43  ;;  %v58_v47 = vld [vmem:[#allocation5 + $0x70] sm:$0xff]  ;;  %v59_v48 = vld [vmem:[#allocation5 + $0x78] sm:$0xff]  ;;  %v40_v50 = vld [vmem:[#allocation2] sm:$0xff] }
  0x33   :  { %232 = vmatpush3.bf16.msra.mxu0 %v231_v19  ;;  %263 = vmatpush3.bf16.msra.mxu1 %v231_v19  ;;  %v251_v49 = vpack.c.bf16 %v59_v48, %v58_v47  ;;  %v42_v51 = vld [vmem:[#allocation2 + $0x10] sm:$0xff] }
  0x34   :  { %234 = vmatprep.subr.bf16.mxu0 %v233_v20  ;;  %256 = vmatprep.subr.bf16.mxu1 %v233_v20 }
  0x37   :  { %236 = vmatpush3.bf16.msra.mxu0 %v235_v27  ;;  %264 = vmatpush3.bf16.msra.mxu1 %v235_v27 }
  0x38   :  { %238 = vmatprep.subr.bf16.mxu0 %v237_v28  ;;  %257 = vmatprep.subr.bf16.mxu1 %v237_v28 }
  0x3b   :  { %240 = vmatpush3.bf16.msra.mxu0 %v239_v33  ;;  %265 = vmatpush3.bf16.msra.mxu1 %v239_v33 }
  0x3c   :  { %242 = vmatprep.subr.bf16.mxu0 %v241_v34  ;;  %258 = vmatprep.subr.bf16.mxu1 %v241_v34 }
  0x3f   :  { %244 = vmatpush3.bf16.msra.mxu0 %v243_v39  ;;  %266 = vmatpush3.bf16.msra.mxu1 %v243_v39 }
  0x40   :  { %246 = vmatprep.subr.bf16.mxu0 %v245_v40  ;;  %259 = vmatprep.subr.bf16.mxu1 %v245_v40 }
  0x43   :  { %248 = vmatpush3.bf16.msra.mxu0 %v247_v45  ;;  %267 = vmatpush3.bf16.msra.mxu1 %v247_v45 }
  0x44   :  { %250 = vmatprep.subr.bf16.mxu0 %v249_v46  ;;  %260 = vmatprep.subr.bf16.mxu1 %v249_v46 }
  0x47   :  { %252 = vmatpush3.bf16.msra.mxu0 %v251_v49  ;;  %268 = vmatpush3.bf16.msra.mxu1 %v251_v49 }
  0x4a   :  { %141 = vmatmul.mubr.f32.vlgmr.msra.gmra.mrb[0].mxu0 %v40_v50  ;;  %146 = vmatmul.mubr.f32.vlgmr.msra.gmra.mrb[0].mxu1 %v42_v51 }
 0x11d   :  { %v215_v52 = vpop.f32.mrb[0].mxu0  ;;  %v218_v53 = vpop.f32.mrb[0].mxu1 }
 0x11e   :  { %v216_v54 = vpop.f32.mrb[1].mxu0  ;;  %v219_v55 = vpop.f32.mrb[1].mxu1 }
 0x11f   :  { %v217_v56 = vadd.f32 %v216_v54, %v215_v52  ;;  %v220_v57 = vadd.f32 %v219_v55, %v218_v53 }
 0x121   :  { %v151_v58 = vmul.f32 %v217_v56, %v217_v56  ;;  %v152_v59 = vmul.f32 %v220_v57, %v220_v57 }
 0x123   :  { %153 = vadd.xlane.f32.xlu0 %v151_v58 }
 0x127   :  { %155 = vadd.xlane.f32.xlu0 %v152_v59 }
 0x1b0   :  { %v154_v60 = vpop.xlane.xlu0 %153 }
 0x1b1   :  { %v157_v61 = vmax.f32 %v154_v60, 1e-24 }
 0x1b3   :  { %276 = vrsqrt.f32 %v157_v61 }
 0x1b4   :  { %v156_v62 = vpop.xlane.xlu0 %155 }
 0x1b5   :  { %v158_v63 = vmax.f32 %v156_v62, 1e-24 }
 0x1b7   :  { %278 = vrsqrt.f32 %v158_v63 }
 0x1bd   :  { %v277_v0 = vpop.eup %276 }
 0x1be   :  { %v161_v1 = vmul.f32 %v277_v0, %v217_v56 }
 0x1c0   :  { %163 = vst [vmem:[#allocation7] sm:$0xff] %v161_v1 }
 0x1c1   :  { %v279_v2 = vpop.eup %278 }
 0x1c2   :  { %v162_v3 = vmul.f32 %v279_v2, %v220_v57 }
 0x1c4   :  { %164 = vst [vmem:[#allocation7 + $0x8] sm:$0xff] %v162_v3 }
 0x1c5   :  { %335 = shalt.err (!%p332_p6)
}
 0x1c6   :  { %s336_s12 = scalar_lea.hbm %s418_s2, 256 }
 0x1c7   :  { %p337_p7 = scmp.ne.s32.totalorder %s418_s2, %s336_s12  ;;  %p340_p8 = scmp.lt.u32.totalorder %s336_s12, %s418_s2 }
 0x1c9   :  { %p342_p9 = pnand %p340_p8, %p337_p7 }
 0x1cb   :  { %345 = shalt.err (!%p342_p9)
}
 0x1cc   :  { %176 = dma.vmem_to_hbm [thread:$0]  %s171_s8, 256, %s418_s2, [#allocation4], %s356_s0, %s356_s0, %s357_s5  }
 0x1cd   :  { %350 = dma.done.wait [#allocation4], 256  }
 0x1ce   :  { %351 = vsyncadd [#allocation4], 4294967040 }
 0x1cf   :  { %180 = vsyncpa [#allocation3], 1 }
 0x1d0   :  { %181 = vsyncpa [#allocation6], 1 }
 0x1d1   :  { %182 = vsyncpa [#allocation4], 1 }

</bundles_post_ra>
